<compile_context>
chip_gen: v7x
topology: tpu7x:2x2x1
jax: 0.10.0
libtpu: 0.0.40
codegen_flags: <defaults>
</compile_context>

<pallas_src>
import functools
import math

import jax
import jax.numpy as jnp
from jax import lax
from jax.experimental import pallas as pl
from jax.experimental.pallas import tpu as pltpu


def as_list(x):
    return x if isinstance(x, list) else [x]


def _round_up(v, m):
    return (v + m - 1) // m * m


def _pad2(w, rows, cols, dtype=None):
    w = jnp.pad(w, ((0, rows - w.shape[0]), (0, cols - w.shape[1])))
    return w if dtype is None else w.astype(dtype)


# ----------------------------------------------------------------------------
# Pallas kernels
# ----------------------------------------------------------------------------
def fused_lif_readout_kernel(alpha, beta, thr, unroll,
                             x_ref, w_in_ref, w_rec_ref, w_out_ref,
                             out_ref,
                             cur_ref, syn_ref, mem_ref, s_ref,
                             syn_o_ref, mem_o_ref):
    """Last recurrent spiking layer fused with the leaky membrane readout.

    x_ref:    (T_CHUNK, B_TILE, Nin)    w_in_ref:  (Nin, H)
    w_rec_ref:(H, H)                    w_out_ref: (H, O)
    out_ref:  (T_CHUNK, B_TILE, O)      cur_ref:   (T_CHUNK, B_TILE, H) scratch
    carries:  syn/mem/s (B_TILE, H), syn_o/mem_o (B_TILE, O) — persist across
              time chunks, re-initialised at the first chunk of each batch tile.
    """
    tc, bt, nin = x_ref.shape
    hdim = w_rec_ref.shape[0]
    odim = w_out_ref.shape[1]
    wdt = w_rec_ref.dtype

    @pl.when(pl.program_id(1) == 0)
    def _init():
        syn_ref[...] = jnp.zeros_like(syn_ref)
        mem_ref[...] = jnp.zeros_like(mem_ref)
        s_ref[...] = jnp.zeros_like(s_ref)
        syn_o_ref[...] = jnp.zeros_like(syn_o_ref)
        mem_o_ref[...] = jnp.zeros_like(mem_o_ref)

    # Hoisted input projection: one (tc*bt, Nin) x (Nin, H) GEMM per chunk.
    # Reshape merges the two leading dims only; bt % 8 == 0 so it is sublane-
    # tile aligned and the lane dim is untouched (no relayout copy).
    x2 = x_ref[...].astype(wdt).reshape(tc * bt, nin)
    cur_ref[...] = jnp.dot(x2, w_in_ref[...],
                           preferred_element_type=jnp.float32).reshape(tc, bt, hdim)

    w_rec = w_rec_ref[...]

    # Serial LIF recurrence: only s @ W_rec + the elementwise LIF chain stay
    # on the per-step critical path (readout is hoisted below).
    def step(t, carry):
        syn, mem, s = carry
        cur = cur_ref[t] + jnp.dot(s.astype(wdt), w_rec,
                                   preferred_element_type=jnp.float32)
        syn = alpha * syn + cur
        mem = beta * mem * (1.0 - s) + syn
        s = (mem > thr).astype(jnp.float32)
        cur_ref[t] = s                      # cur_ref[t] is dead -> stash spikes
        return syn, mem, s

    syn, mem, s = lax.fori_loop(
        0, tc, step, (syn_ref[...], mem_ref[...], s_ref[...]), unroll=unroll)
    syn_ref[...] = syn
    mem_ref[...] = mem
    s_ref[...] = s

    # Hoisted readout: one MXU-efficient GEMM over the whole chunk's spikes,
    # written in place into out_ref, then a cheap elementwise leaky scan.
    spikes2 = cur_ref[...].astype(wdt).reshape(tc * bt, hdim)
    out_ref[...] = jnp.dot(spikes2, w_out_ref[...],
                           preferred_element_type=jnp.float32
                           ).reshape(tc, bt, odim).astype(out_ref.dtype)

    def rd_step(t, carry):
        syn_o, mem_o = carry
        syn_o = alpha * syn_o + out_ref[t].astype(jnp.float32)
        mem_o = beta * mem_o + syn_o
        out_ref[t] = mem_o.astype(out_ref.dtype)
        return syn_o, mem_o

    syn_o, mem_o = lax.fori_loop(
        0, tc, rd_step, (syn_o_ref[...], mem_o_ref[...]), unroll=unroll)
    syn_o_ref[...] = syn_o
    mem_o_ref[...] = mem_o


def lif_hidden_kernel(alpha, beta, thr, unroll,
                      x_ref, w_in_ref, w_rec_ref,
                      spk_ref,
                      cur_ref, syn_ref, mem_ref, s_ref):
    """Recurrent spiking layer that emits its spike train (multi-layer configs)."""
    tc, bt, nin = x_ref.shape
    hdim = w_rec_ref.shape[0]
    wdt = w_rec_ref.dtype

    @pl.when(pl.program_id(1) == 0)
    def _init():
        syn_ref[...] = jnp.zeros_like(syn_ref)
        mem_ref[...] = jnp.zeros_like(mem_ref)
        s_ref[...] = jnp.zeros_like(s_ref)

    x2 = x_ref[...].astype(wdt).reshape(tc * bt, nin)
    cur_ref[...] = jnp.dot(x2, w_in_ref[...],
                           preferred_element_type=jnp.float32).reshape(tc, bt, hdim)

    w_rec = w_rec_ref[...]

    def step(t, carry):
        syn, mem, s = carry
        cur = cur_ref[t] + jnp.dot(s.astype(wdt), w_rec,
                                   preferred_element_type=jnp.float32)
        syn = alpha * syn + cur
        mem = beta * mem * (1.0 - s) + syn
        s = (mem > thr).astype(jnp.float32)
        spk_ref[t] = s.astype(spk_ref.dtype)
        return syn, mem, s

    syn, mem, s = lax.fori_loop(
        0, tc, step, (syn_ref[...], mem_ref[...], s_ref[...]), unroll=unroll)
    syn_ref[...] = syn
    mem_ref[...] = mem
    s_ref[...] = s


# ----------------------------------------------------------------------------
# pallas_call wrappers (grid over (batch tiles, time chunks))
# ----------------------------------------------------------------------------
def _vmem_limit_bytes():
    try:
        cap = int(pltpu.get_tpu_info().vmem_capacity_bytes)
    except Exception:
        return 48 * 1024 * 1024                     # safe on every generation
    # ~96 MiB on v5e/v6e (128 MiB physical), ~48 MiB on v7x (64 MiB physical).
    return int(min(cap * 3 // 4, 100 * 1024 * 1024))


def _compiler_params(vmem_limit):
    return pltpu.CompilerParams(
        dimension_semantics=("parallel", "arbitrary"),
        vmem_limit_bytes=int(vmem_limit),
    )


def _unroll_for(t_chunk):
    if t_chunk % 4 == 0:
        return 4
    if t_chunk % 2 == 0:
        return 2
    return True if t_chunk <= 8 else 1


def _fused_layer(h_tm, w_in, w_rec, w_out, alpha, beta, thr, *,
                 t_chunk, b_tile, out_dtype, vmem_limit):
    t_pad, b_pad, nin = h_tm.shape
    hdim = w_rec.shape[0]
    odim = w_out.shape[1]
    grid = (b_pad // b_tile, t_pad // t_chunk)
    kernel = functools.partial(fused_lif_readout_kernel,
                               alpha, beta, thr, _unroll_for(t_chunk))
    return pl.pallas_call(
        kernel,
        out_shape=jax.ShapeDtypeStruct((t_pad, b_pad, odim), out_dtype),
        grid_spec=pltpu.PrefetchScalarGridSpec(
            num_scalar_prefetch=0,
            grid=grid,
            in_specs=[
                pl.BlockSpec((t_chunk, b_tile, nin), lambda b, t: (t, b, 0)),
                pl.BlockSpec((nin, hdim), lambda b, t: (0, 0)),
                pl.BlockSpec((hdim, hdim), lambda b, t: (0, 0)),
                pl.BlockSpec((hdim, odim), lambda b, t: (0, 0)),
            ],
            out_specs=pl.BlockSpec((t_chunk, b_tile, odim), lambda b, t: (t, b, 0)),
            scratch_shapes=[
                pltpu.VMEM((t_chunk, b_tile, hdim), jnp.float32),   # x@W_in, then spikes
                pltpu.VMEM((b_tile, hdim), jnp.float32),            # syn
                pltpu.VMEM((b_tile, hdim), jnp.float32),            # mem
                pltpu.VMEM((b_tile, hdim), jnp.float32),            # s
                pltpu.VMEM((b_tile, odim), jnp.float32),            # syn_out
                pltpu.VMEM((b_tile, odim), jnp.float32),            # mem_out
            ],
        ),
        compiler_params=_compiler_params(vmem_limit),
    )(h_tm, w_in, w_rec, w_out)


def _hidden_layer(h_tm, w_in, w_rec, alpha, beta, thr, *,
                  t_chunk, b_tile, spike_dtype, vmem_limit):
    t_pad, b_pad, nin = h_tm.shape
    hdim = w_rec.shape[0]
    grid = (b_pad // b_tile, t_pad // t_chunk)
    kernel = functools.partial(lif_hidden_kernel,
                               alpha, beta, thr, _unroll_for(t_chunk))
    return pl.pallas_call(
        kernel,
        out_shape=jax.ShapeDtypeStruct((t_pad, b_pad, hdim), spike_dtype),
        grid_spec=pltpu.PrefetchScalarGridSpec(
            num_scalar_prefetch=0,
            grid=grid,
            in_specs=[
                pl.BlockSpec((t_chunk, b_tile, nin), lambda b, t: (t, b, 0)),
                pl.BlockSpec((nin, hdim), lambda b, t: (0, 0)),
                pl.BlockSpec((hdim, hdim), lambda b, t: (0, 0)),
            ],
            out_specs=pl.BlockSpec((t_chunk, b_tile, hdim), lambda b, t: (t, b, 0)),
            scratch_shapes=[
                pltpu.VMEM((t_chunk, b_tile, hdim), jnp.float32),
                pltpu.VMEM((b_tile, hdim), jnp.float32),
                pltpu.VMEM((b_tile, hdim), jnp.float32),
                pltpu.VMEM((b_tile, hdim), jnp.float32),
            ],
        ),
        compiler_params=_compiler_params(vmem_limit),
    )(h_tm, w_in, w_rec)


# ----------------------------------------------------------------------------
# RSNN: parameter init + forward
# ----------------------------------------------------------------------------
def init_rsnn_params(key, prms, weight_scale=1.0):
    nb_inputs = prms['nb_inputs']
    nb_recurrent = as_list(prms['nb_recurrent'])
    nb_outputs = prms['nb_outputs']

    sizes = [nb_inputs] + nb_recurrent
    params = {'rec_layers': [], 'w_out': None}
    for i in range(len(nb_recurrent)):
        key, k1, k2 = jax.random.split(key, 3)
        fan_in, fan_h = sizes[i], sizes[i + 1]
        w_in = (weight_scale / math.sqrt(fan_in)) * jax.random.normal(
            k1, (fan_in, fan_h), jnp.float32)
        w_rec = (weight_scale / math.sqrt(fan_h)) * jax.random.normal(
            k2, (fan_h, fan_h), jnp.float32)
        params['rec_layers'].append((w_in, w_rec))
    key, k3 = jax.random.split(key)
    params['w_out'] = (weight_scale / math.sqrt(nb_recurrent[-1])) * jax.random.normal(
        k3, (nb_recurrent[-1], nb_outputs), jnp.float32)
    return params


def rsnn_forward(params, x, prms, *, t_chunk=64, b_tile=None,
                 weight_dtype=jnp.float32, out_dtype=jnp.float32,
                 spike_dtype=jnp.bfloat16):
    """x: (B, T, nb_inputs) -> readout membrane (B, T, nb_outputs).

    weight_dtype=jnp.bfloat16 enables the bf16 MXU fast path (spikes are exact
    0/1 in bf16; LIF elementwise math stays f32); default f32 preserves the
    hard-threshold spike semantics of the reference exactly.
    """
    dt = float(prms.get('time_step', 1e-3))
    alpha = float(math.exp(-dt / prms.get('tau_syn', 5e-3)))
    beta = float(math.exp(-dt / prms.get('tau_mem', 10e-3)))
    thr = float(prms.get('threshold', 1.0))
    # NOTE: padded hidden units have zero in/out weights -> they never affect
    # real units even if they happen to cross threshold.

    B, T, _ = x.shape
    O = params['w_out'].shape[1]
    rec = params['rec_layers']

    # --- generation-aware VMEM budget & tiling -------------------------------
    vmem_limit = _vmem_limit_bytes()

    B_pad = _round_up(B, 8)
    if b_tile is None:
        target = 256 if B_pad >= 512 else 128         # M of the serial recurrent matmul
        b_tile = min(target, B_pad)
        if B_pad < 2 * b_tile and B_pad >= 16:        # >=2 batch tiles -> feed both TCs (v7x)
            b_tile = _round_up(B_pad // 2, 8)
    b_tile = min(_round_up(b_tile, 8), B_pad)
    B_pad = _round_up(B_pad, b_tile)

    t_chunk = max(1, min(t_chunk, T))
    h_max = max(_round_up(w.shape[0], 128) for _, w in rec)
    o_pad = _round_up(O, 128)
    nin_max = max(x.shape[2], h_max if len(rec) > 1 else 0)
    wbytes = jnp.dtype(weight_dtype).itemsize
    out_row = o_pad * jnp.dtype(out_dtype).itemsize
    if len(rec) > 1:
        out_row = max(out_row, h_max * jnp.dtype(spike_dtype).itemsize)

    def _vmem_est(tc):
        io = 2 * tc * b_tile * (nin_max * 4 + out_row)                    # double-buffered blocks
        weights = 2 * (nin_max * h_max + h_max * h_max + h_max * o_pad) * wbytes
        scratch = tc * b_tile * h_max * 4 + 3 * b_tile * h_max * 4 + 2 * b_tile * o_pad * 4
        return io + weights + scratch

    while t_chunk > 8 and _vmem_est(t_chunk) > 0.8 * vmem_limit:
        t_chunk = max(8, t_chunk // 2)
    T_pad = _round_up(T, t_chunk)

    # Single fused pad+transpose pass over x -> time-major (T_pad, B_pad, Nin).
    h = jnp.transpose(x.astype(jnp.float32), (1, 0, 2))
    h = jnp.pad(h, ((0, T_pad - T), (0, B_pad - B), (0, 0)))

    # Hidden recurrent spiking layers (multi-layer configs); inter-layer spikes
    # stream in bf16 (exact for 0/1 values).
    for (w_in, w_rec) in rec[:-1]:
        H_pad = _round_up(w_rec.shape[0], 128)
        w_in_p = _pad2(w_in, h.shape[2], H_pad, weight_dtype)
        w_rec_p = _pad2(w_rec, H_pad, H_pad, weight_dtype)
        h = _hidden_layer(h, w_in_p, w_rec_p, alpha, beta, thr,
                          t_chunk=t_chunk, b_tile=b_tile,
                          spike_dtype=spike_dtype, vmem_limit=vmem_limit)

    # Last recurrent spiking layer fused with the leaky membrane readout.
    w_in, w_rec = rec[-1]
    H_pad = _round_up(w_rec.shape[0], 128)
    w_in_p = _pad2(w_in, h.shape[2], H_pad, weight_dtype)
    w_rec_p = _pad2(w_rec, H_pad, H_pad, weight_dtype)
    w_out_p = _pad2(params['w_out'], H_pad, o_pad, weight_dtype)
    out_tm = _fused_layer(h, w_in_p, w_rec_p, w_out_p, alpha, beta, thr,
                          t_chunk=t_chunk, b_tile=b_tile,
                          out_dtype=out_dtype, vmem_limit=vmem_limit)

    return jnp.transpose(out_tm[:T, :B, :O], (1, 0, 2))                  # (B, T, O)


# ----------------------------------------------------------------------------
# Pure-JAX reference (for correctness check)
# ----------------------------------------------------------------------------
def rsnn_reference(params, x, prms):
    dt = float(prms.get('time_step', 1e-3))
    alpha = math.exp(-dt / prms.get('tau_syn', 5e-3))
    beta = math.exp(-dt / prms.get('tau_mem', 10e-3))
    thr = prms.get('threshold', 1.0)
    hp = lax.Precision.HIGHEST

    h = jnp.transpose(x.astype(jnp.float32), (1, 0, 2))          # (T, B, Nin)
    for (w_in, w_rec) in params['rec_layers']:
        Bb, H = h.shape[1], w_rec.shape[0]

        def step(carry, x_t, w_in=w_in, w_rec=w_rec):
            syn, mem, s = carry
            cur = (jnp.dot(x_t, w_in, precision=hp)
                   + jnp.dot(s, w_rec, precision=hp))
            syn = alpha * syn + cur
            mem = beta * mem * (1.0 - s) + syn
            s = (mem > thr).astype(jnp.float32)
            return (syn, mem, s), s

        z = jnp.zeros((Bb, H), jnp.float32)
        _, h = lax.scan(step, (z, z, z), h)

    w_out = params['w_out']
    O = w_out.shape[1]

    def rstep(carry, s_t):
        syn, mem = carry
        syn = alpha * syn + jnp.dot(s_t, w_out, precision=hp)
        mem = beta * mem + syn
        return (syn, mem), mem

    z = jnp.zeros((h.shape[1], O), jnp.float32)
    _, out = lax.scan(rstep, (z, z), h)
    return jnp.transpose(out, (1, 0, 2))


# ----------------------------------------------------------------------------
if __name__ == "__main__":
    base_prms = {
        'nb_inputs': 16,
        'nb_recurrent': [32],
        'nb_outputs': 8,
        'time_step': 1e-3,
        'tau_syn': 5e-3,
        'tau_mem': 10e-3,
        'threshold': 1.0,
    }

    key = jax.random.PRNGKey(0)

    # --- Test A: single layer, 2 batch tiles x 4 time chunks (carry reuse) ---
    B, T = 12, 16
    k_param, k_x, key = jax.random.split(key, 3)
    params = init_rsnn_params(k_param, base_prms, weight_scale=5.0)
    x = (jax.random.uniform(k_x, (B, T, base_prms['nb_inputs'])) < 0.3).astype(jnp.float32)

    fwd = jax.jit(functools.partial(rsnn_forward, prms=base_prms, t_chunk=4))
    out = jax.block_until_ready(fwd(params, x))
    assert out.shape == (B, T, base_prms['nb_outputs']), out.shape
    assert bool(jnp.all(jnp.isfinite(out)))
    ref = jax.block_until_ready(rsnn_reference(params, x, base_prms))
    assert bool(jnp.allclose(out, ref, atol=1e-3, rtol=1e-3)), \
        float(jnp.max(jnp.abs(out - ref)))

    # --- Test B: two recurrent layers (exercises the hidden-layer kernel) ---
    prms2 = dict(base_prms, nb_recurrent=[32, 24])
    k_param2, k_x2, key = jax.random.split(key, 3)
    params2 = init_rsnn_params(k_param2, prms2, weight_scale=5.0)
    x2 = (jax.random.uniform(k_x2, (4, 8, prms2['nb_inputs'])) < 0.3).astype(jnp.float32)
    fwd2 = jax.jit(functools.partial(rsnn_forward, prms=prms2))
    out2 = jax.block_until_ready(fwd2(params2, x2))
    assert out2.shape == (4, 8, prms2['nb_outputs']), out2.shape
    ref2 = jax.block_until_ready(rsnn_reference(params2, x2, prms2))
    assert bool(jnp.allclose(out2, ref2, atol=1e-3, rtol=1e-3)), \
        float(jnp.max(jnp.abs(out2 - ref2)))

    # --- Test C: bf16 MXU fast path (reduced precision mode, smoke test) ----
    fwd_fast = jax.jit(functools.partial(
        rsnn_forward, prms=base_prms, t_chunk=4,
        weight_dtype=jnp.bfloat16, out_dtype=jnp.bfloat16))
    out_fast = jax.block_until_ready(fwd_fast(params, x))
    assert out_fast.shape == (B, T, base_prms['nb_outputs']), out_fast.shape
    assert bool(jnp.all(jnp.isfinite(out_fast.astype(jnp.float32))))

    print("KERNEL_OK")
</pallas_src>

<mosaic_0001>
module attributes {stable_mosaic.version = 11 : i64} {
  func.func @fused_lif_readout_kernel(%arg0: i32, %arg1: i32, %arg2: memref<4x8x16xf32, #tpu.memory_space<vmem>>, %arg3: memref<16x128xf32, #tpu.memory_space<vmem>>, %arg4: memref<128x128xf32, #tpu.memory_space<vmem>>, %arg5: memref<128x128xf32, #tpu.memory_space<vmem>>, %arg6: memref<4x8x128xf32, #tpu.memory_space<vmem>>, %arg7: memref<4x8x128xf32, #tpu.memory_space<vmem>>, %arg8: memref<8x128xf32, #tpu.memory_space<vmem>>, %arg9: memref<8x128xf32, #tpu.memory_space<vmem>>, %arg10: memref<8x128xf32, #tpu.memory_space<vmem>>, %arg11: memref<8x128xf32, #tpu.memory_space<vmem>>, %arg12: memref<8x128xf32, #tpu.memory_space<vmem>>) attributes {dimension_semantics = [#tpu.dimension_semantics<parallel>, #tpu.dimension_semantics<arbitrary>], iteration_bounds = array<i64: 2, 4>, scalar_prefetch = 0 : i64, scratch_operands = 6 : i64, tpu.core_type = #tpu.core_type<tc>, window_params = [{transform_indices = @transform_0, window_bounds = array<i64: 4, 8, 16>}, {pipeline_mode = #tpu.pipeline_mode<synchronous>, transform_indices = @transform_1, window_bounds = array<i64: 16, 128>}, {pipeline_mode = #tpu.pipeline_mode<synchronous>, transform_indices = @transform_2, window_bounds = array<i64: 128, 128>}, {pipeline_mode = #tpu.pipeline_mode<synchronous>, transform_indices = @transform_3, window_bounds = array<i64: 128, 128>}, {transform_indices = @transform_4, window_bounds = array<i64: 4, 8, 128>}]} {
    %c0_i32 = arith.constant 0 : i32
    %0 = arith.cmpi eq, %arg1, %c0_i32 : i32
    %1 = arith.extui %0 : i1 to i32
    %c0_i32_0 = arith.constant 0 : i32
    %2 = arith.cmpi ne, %1, %c0_i32_0 : i32
    scf.if %2 {
      %cst_105 = arith.constant 0.000000e+00 : f32
      %166 = vector.broadcast %cst_105 : f32 to vector<8x128xf32>
      %c0_106 = arith.constant 0 : index
      %c0_107 = arith.constant 0 : index
      %167 = vector.load %arg8[%c0_106, %c0_107] : memref<8x128xf32, #tpu.memory_space<vmem>>, vector<8x128xf32>
      tpu.vector_store %arg8[%c0_106, %c0_107], %166 {strides = array<i32>} : memref<8x128xf32, #tpu.memory_space<vmem>>, vector<8x128xf32>,
      %cst_108 = arith.constant 0.000000e+00 : f32
      %168 = vector.broadcast %cst_108 : f32 to vector<8x128xf32>
      %c0_109 = arith.constant 0 : index
      %c0_110 = arith.constant 0 : index
      %169 = vector.load %arg9[%c0_109, %c0_110] : memref<8x128xf32, #tpu.memory_space<vmem>>, vector<8x128xf32>
      tpu.vector_store %arg9[%c0_109, %c0_110], %168 {strides = array<i32>} : memref<8x128xf32, #tpu.memory_space<vmem>>, vector<8x128xf32>,
      %cst_111 = arith.constant 0.000000e+00 : f32
      %170 = vector.broadcast %cst_111 : f32 to vector<8x128xf32>
      %c0_112 = arith.constant 0 : index
      %c0_113 = arith.constant 0 : index
      %171 = vector.load %arg10[%c0_112, %c0_113] : memref<8x128xf32, #tpu.memory_space<vmem>>, vector<8x128xf32>
      tpu.vector_store %arg10[%c0_112, %c0_113], %170 {strides = array<i32>} : memref<8x128xf32, #tpu.memory_space<vmem>>, vector<8x128xf32>,
      %cst_114 = arith.constant 0.000000e+00 : f32
      %172 = vector.broadcast %cst_114 : f32 to vector<8x128xf32>
      %c0_115 = arith.constant 0 : index
      %c0_116 = arith.constant 0 : index
      %173 = vector.load %arg11[%c0_115, %c0_116] : memref<8x128xf32, #tpu.memory_space<vmem>>, vector<8x128xf32>
      tpu.vector_store %arg11[%c0_115, %c0_116], %172 {strides = array<i32>} : memref<8x128xf32, #tpu.memory_space<vmem>>, vector<8x128xf32>,
      %cst_117 = arith.constant 0.000000e+00 : f32
      %174 = vector.broadcast %cst_117 : f32 to vector<8x128xf32>
      %c0_118 = arith.constant 0 : index
      %c0_119 = arith.constant 0 : index
      %175 = vector.load %arg12[%c0_118, %c0_119] : memref<8x128xf32, #tpu.memory_space<vmem>>, vector<8x128xf32>
      tpu.vector_store %arg12[%c0_118, %c0_119], %174 {strides = array<i32>} : memref<8x128xf32, #tpu.memory_space<vmem>>, vector<8x128xf32>,
    } else {
    }
    %c0 = arith.constant 0 : index
    %c0_1 = arith.constant 0 : index
    %c0_2 = arith.constant 0 : index
    %3 = vector.load %arg2[%c0, %c0_1, %c0_2] : memref<4x8x16xf32, #tpu.memory_space<vmem>>, vector<4x8x16xf32>
    %4 = vector.shape_cast %3 : vector<4x8x16xf32> to vector<32x16xf32>
    %c0_3 = arith.constant 0 : index
    %c0_4 = arith.constant 0 : index
    %5 = vector.load %arg3[%c0_3, %c0_4] : memref<16x128xf32, #tpu.memory_space<vmem>>, vector<16x128xf32>
    %cst = arith.constant dense<0.000000e+00> : vector<32x128xf32>
    %6 = tpu.matmul %4, %5, %cst {dimension_numbers = #tpu.dot_dimension_numbers<[1], [0], [0], [1], [0, 0, 1, 1], [], []>} : vector<32x16xf32>, vector<16x128xf32>, vector<32x128xf32> -> vector<32x128xf32>
    %7 = vector.shape_cast %6 : vector<32x128xf32> to vector<4x8x128xf32>
    %c0_5 = arith.constant 0 : index
    %c0_6 = arith.constant 0 : index
    %c0_7 = arith.constant 0 : index
    %8 = vector.load %arg7[%c0_5, %c0_6, %c0_7] : memref<4x8x128xf32, #tpu.memory_space<vmem>>, vector<4x8x128xf32>
    tpu.vector_store %arg7[%c0_5, %c0_6, %c0_7], %7 {strides = array<i32>} : memref<4x8x128xf32, #tpu.memory_space<vmem>>, vector<4x8x128xf32>,
    %c0_8 = arith.constant 0 : index
    %c0_9 = arith.constant 0 : index
    %9 = vector.load %arg4[%c0_8, %c0_9] : memref<128x128xf32, #tpu.memory_space<vmem>>, vector<128x128xf32>
    %c0_10 = arith.constant 0 : index
    %c0_11 = arith.constant 0 : index
    %10 = vector.load %arg8[%c0_10, %c0_11] : memref<8x128xf32, #tpu.memory_space<vmem>>, vector<8x128xf32>
    %c0_12 = arith.constant 0 : index
    %c0_13 = arith.constant 0 : index
    %11 = vector.load %arg9[%c0_12, %c0_13] : memref<8x128xf32, #tpu.memory_space<vmem>>, vector<8x128xf32>
    %c0_14 = arith.constant 0 : index
    %c0_15 = arith.constant 0 : index
    %12 = vector.load %arg10[%c0_14, %c0_15] : memref<8x128xf32, #tpu.memory_space<vmem>>, vector<8x128xf32>
    %c0_i32_16 = arith.constant 0 : i32
    %13 = arith.index_cast %c0_i32_16 : i32 to index
    %c0_17 = arith.constant 0 : index
    %c0_18 = arith.constant 0 : index
    %14 = vector.load %arg7[%13, %c0_17, %c0_18] : memref<4x8x128xf32, #tpu.memory_space<vmem>>, vector<1x8x128xf32>
    %15 = vector.shape_cast %14 : vector<1x8x128xf32> to vector<8x128xf32>
    %cst_19 = arith.constant dense<0.000000e+00> : vector<8x128xf32>
    %16 = tpu.matmul %12, %9, %cst_19 {dimension_numbers = #tpu.dot_dimension_numbers<[1], [0], [0], [1], [0, 0, 1, 1], [], []>} : vector<8x128xf32>, vector<128x128xf32>, vector<8x128xf32> -> vector<8x128xf32>
    %17 = arith.addf %15, %16 : vector<8x128xf32>
    %cst_20 = arith.constant 0.818730771 : f32
    %18 = vector.broadcast %cst_20 : f32 to vector<8x128xf32>
    %19 = arith.mulf %18, %10 : vector<8x128xf32>
    %20 = arith.addf %19, %17 : vector<8x128xf32>
    %cst_21 = arith.constant 0.904837429 : f32
    %21 = vector.broadcast %cst_21 : f32 to vector<8x128xf32>
    %22 = arith.mulf %21, %11 : vector<8x128xf32>
    %cst_22 = arith.constant 1.000000e+00 : f32
    %23 = vector.broadcast %cst_22 : f32 to vector<8x128xf32>
    %24 = arith.subf %23, %12 : vector<8x128xf32>
    %25 = arith.mulf %22, %24 : vector<8x128xf32>
    %26 = arith.addf %25, %20 : vector<8x128xf32>
    %cst_23 = arith.constant 1.000000e+00 : f32
    %27 = vector.broadcast %cst_23 : f32 to vector<8x128xf32>
    %28 = arith.cmpf ogt, %26, %27 : vector<8x128xf32>
    %29 = arith.extui %28 : vector<8x128xi1> to vector<8x128xi32>
    %30 = arith.sitofp %29 : vector<8x128xi32> to vector<8x128xf32>
    %31 = arith.index_cast %c0_i32_16 : i32 to index
    %c0_24 = arith.constant 0 : index
    %c0_25 = arith.constant 0 : index
    %32 = vector.load %arg7[%31, %c0_24, %c0_25] : memref<4x8x128xf32, #tpu.memory_space<vmem>>, vector<1x8x128xf32>
    %33 = vector.shape_cast %32 : vector<1x8x128xf32> to vector<8x128xf32>
    %34 = vector.shape_cast %30 : vector<8x128xf32> to vector<1x8x128xf32>
    tpu.vector_store %arg7[%31, %c0_24, %c0_25], %34 {strides = array<i32>} : memref<4x8x128xf32, #tpu.memory_space<vmem>>, vector<1x8x128xf32>,
    %c1_i32 = arith.constant 1 : i32
    %35 = arith.index_cast %c1_i32 : i32 to index
    %c0_26 = arith.constant 0 : index
    %c0_27 = arith.constant 0 : index
    %36 = vector.load %arg7[%35, %c0_26, %c0_27] : memref<4x8x128xf32, #tpu.memory_space<vmem>>, vector<1x8x128xf32>
    %37 = vector.shape_cast %36 : vector<1x8x128xf32> to vector<8x128xf32>
    %cst_28 = arith.constant dense<0.000000e+00> : vector<8x128xf32>
    %38 = tpu.matmul %30, %9, %cst_28 {dimension_numbers = #tpu.dot_dimension_numbers<[1], [0], [0], [1], [0, 0, 1, 1], [], []>} : vector<8x128xf32>, vector<128x128xf32>, vector<8x128xf32> -> vector<8x128xf32>
    %39 = arith.addf %37, %38 : vector<8x128xf32>
    %cst_29 = arith.constant 0.818730771 : f32
    %40 = vector.broadcast %cst_29 : f32 to vector<8x128xf32>
    %41 = arith.mulf %40, %20 : vector<8x128xf32>
    %42 = arith.addf %41, %39 : vector<8x128xf32>
    %cst_30 = arith.constant 0.904837429 : f32
    %43 = vector.broadcast %cst_30 : f32 to vector<8x128xf32>
    %44 = arith.mulf %43, %26 : vector<8x128xf32>
    %cst_31 = arith.constant 1.000000e+00 : f32
    %45 = vector.broadcast %cst_31 : f32 to vector<8x128xf32>
    %46 = arith.subf %45, %30 : vector<8x128xf32>
    %47 = arith.mulf %44, %46 : vector<8x128xf32>
    %48 = arith.addf %47, %42 : vector<8x128xf32>
    %cst_32 = arith.constant 1.000000e+00 : f32
    %49 = vector.broadcast %cst_32 : f32 to vector<8x128xf32>
    %50 = arith.cmpf ogt, %48, %49 : vector<8x128xf32>
    %51 = arith.extui %50 : vector<8x128xi1> to vector<8x128xi32>
    %52 = arith.sitofp %51 : vector<8x128xi32> to vector<8x128xf32>
    %53 = arith.index_cast %c1_i32 : i32 to index
    %c0_33 = arith.constant 0 : index
    %c0_34 = arith.constant 0 : index
    %54 = vector.load %arg7[%53, %c0_33, %c0_34] : memref<4x8x128xf32, #tpu.memory_space<vmem>>, vector<1x8x128xf32>
    %55 = vector.shape_cast %54 : vector<1x8x128xf32> to vector<8x128xf32>
    %56 = vector.shape_cast %52 : vector<8x128xf32> to vector<1x8x128xf32>
    tpu.vector_store %arg7[%53, %c0_33, %c0_34], %56 {strides = array<i32>} : memref<4x8x128xf32, #tpu.memory_space<vmem>>, vector<1x8x128xf32>,
    %c2_i32 = arith.constant 2 : i32
    %57 = arith.index_cast %c2_i32 : i32 to index
    %c0_35 = arith.constant 0 : index
    %c0_36 = arith.constant 0 : index
    %58 = vector.load %arg7[%57, %c0_35, %c0_36] : memref<4x8x128xf32, #tpu.memory_space<vmem>>, vector<1x8x128xf32>
    %59 = vector.shape_cast %58 : vector<1x8x128xf32> to vector<8x128xf32>
    %cst_37 = arith.constant dense<0.000000e+00> : vector<8x128xf32>
    %60 = tpu.matmul %52, %9, %cst_37 {dimension_numbers = #tpu.dot_dimension_numbers<[1], [0], [0], [1], [0, 0, 1, 1], [], []>} : vector<8x128xf32>, vector<128x128xf32>, vector<8x128xf32> -> vector<8x128xf32>
    %61 = arith.addf %59, %60 : vector<8x128xf32>
    %cst_38 = arith.constant 0.818730771 : f32
    %62 = vector.broadcast %cst_38 : f32 to vector<8x128xf32>
    %63 = arith.mulf %62, %42 : vector<8x128xf32>
    %64 = arith.addf %63, %61 : vector<8x128xf32>
    %cst_39 = arith.constant 0.904837429 : f32
    %65 = vector.broadcast %cst_39 : f32 to vector<8x128xf32>
    %66 = arith.mulf %65, %48 : vector<8x128xf32>
    %cst_40 = arith.constant 1.000000e+00 : f32
    %67 = vector.broadcast %cst_40 : f32 to vector<8x128xf32>
    %68 = arith.subf %67, %52 : vector<8x128xf32>
    %69 = arith.mulf %66, %68 : vector<8x128xf32>
    %70 = arith.addf %69, %64 : vector<8x128xf32>
    %cst_41 = arith.constant 1.000000e+00 : f32
    %71 = vector.broadcast %cst_41 : f32 to vector<8x128xf32>
    %72 = arith.cmpf ogt, %70, %71 : vector<8x128xf32>
    %73 = arith.extui %72 : vector<8x128xi1> to vector<8x128xi32>
    %74 = arith.sitofp %73 : vector<8x128xi32> to vector<8x128xf32>
    %75 = arith.index_cast %c2_i32 : i32 to index
    %c0_42 = arith.constant 0 : index
    %c0_43 = arith.constant 0 : index
    %76 = vector.load %arg7[%75, %c0_42, %c0_43] : memref<4x8x128xf32, #tpu.memory_space<vmem>>, vector<1x8x128xf32>
    %77 = vector.shape_cast %76 : vector<1x8x128xf32> to vector<8x128xf32>
    %78 = vector.shape_cast %74 : vector<8x128xf32> to vector<1x8x128xf32>
    tpu.vector_store %arg7[%75, %c0_42, %c0_43], %78 {strides = array<i32>} : memref<4x8x128xf32, #tpu.memory_space<vmem>>, vector<1x8x128xf32>,
    %c3_i32 = arith.constant 3 : i32
    %79 = arith.index_cast %c3_i32 : i32 to index
    %c0_44 = arith.constant 0 : index
    %c0_45 = arith.constant 0 : index
    %80 = vector.load %arg7[%79, %c0_44, %c0_45] : memref<4x8x128xf32, #tpu.memory_space<vmem>>, vector<1x8x128xf32>
    %81 = vector.shape_cast %80 : vector<1x8x128xf32> to vector<8x128xf32>
    %cst_46 = arith.constant dense<0.000000e+00> : vector<8x128xf32>
    %82 = tpu.matmul %74, %9, %cst_46 {dimension_numbers = #tpu.dot_dimension_numbers<[1], [0], [0], [1], [0, 0, 1, 1], [], []>} : vector<8x128xf32>, vector<128x128xf32>, vector<8x128xf32> -> vector<8x128xf32>
    %83 = arith.addf %81, %82 : vector<8x128xf32>
    %cst_47 = arith.constant 0.818730771 : f32
    %84 = vector.broadcast %cst_47 : f32 to vector<8x128xf32>
    %85 = arith.mulf %84, %64 : vector<8x128xf32>
    %86 = arith.addf %85, %83 : vector<8x128xf32>
    %cst_48 = arith.constant 0.904837429 : f32
    %87 = vector.broadcast %cst_48 : f32 to vector<8x128xf32>
    %88 = arith.mulf %87, %70 : vector<8x128xf32>
    %cst_49 = arith.constant 1.000000e+00 : f32
    %89 = vector.broadcast %cst_49 : f32 to vector<8x128xf32>
    %90 = arith.subf %89, %74 : vector<8x128xf32>
    %91 = arith.mulf %88, %90 : vector<8x128xf32>
    %92 = arith.addf %91, %86 : vector<8x128xf32>
    %cst_50 = arith.constant 1.000000e+00 : f32
    %93 = vector.broadcast %cst_50 : f32 to vector<8x128xf32>
    %94 = arith.cmpf ogt, %92, %93 : vector<8x128xf32>
    %95 = arith.extui %94 : vector<8x128xi1> to vector<8x128xi32>
    %96 = arith.sitofp %95 : vector<8x128xi32> to vector<8x128xf32>
    %97 = arith.index_cast %c3_i32 : i32 to index
    %c0_51 = arith.constant 0 : index
    %c0_52 = arith.constant 0 : index
    %98 = vector.load %arg7[%97, %c0_51, %c0_52] : memref<4x8x128xf32, #tpu.memory_space<vmem>>, vector<1x8x128xf32>
    %99 = vector.shape_cast %98 : vector<1x8x128xf32> to vector<8x128xf32>
    %100 = vector.shape_cast %96 : vector<8x128xf32> to vector<1x8x128xf32>
    tpu.vector_store %arg7[%97, %c0_51, %c0_52], %100 {strides = array<i32>} : memref<4x8x128xf32, #tpu.memory_space<vmem>>, vector<1x8x128xf32>,
    %c4_i32 = arith.constant 4 : i32
    %c0_53 = arith.constant 0 : index
    %c0_54 = arith.constant 0 : index
    %101 = vector.load %arg8[%c0_53, %c0_54] : memref<8x128xf32, #tpu.memory_space<vmem>>, vector<8x128xf32>
    tpu.vector_store %arg8[%c0_53, %c0_54], %86 {strides = array<i32>} : memref<8x128xf32, #tpu.memory_space<vmem>>, vector<8x128xf32>,
    %c0_55 = arith.constant 0 : index
    %c0_56 = arith.constant 0 : index
    %102 = vector.load %arg9[%c0_55, %c0_56] : memref<8x128xf32, #tpu.memory_space<vmem>>, vector<8x128xf32>
    tpu.vector_store %arg9[%c0_55, %c0_56], %92 {strides = array<i32>} : memref<8x128xf32, #tpu.memory_space<vmem>>, vector<8x128xf32>,
    %c0_57 = arith.constant 0 : index
    %c0_58 = arith.constant 0 : index
    %103 = vector.load %arg10[%c0_57, %c0_58] : memref<8x128xf32, #tpu.memory_space<vmem>>, vector<8x128xf32>
    tpu.vector_store %arg10[%c0_57, %c0_58], %96 {strides = array<i32>} : memref<8x128xf32, #tpu.memory_space<vmem>>, vector<8x128xf32>,
    %c0_59 = arith.constant 0 : index
    %c0_60 = arith.constant 0 : index
    %c0_61 = arith.constant 0 : index
    %104 = vector.load %arg7[%c0_59, %c0_60, %c0_61] : memref<4x8x128xf32, #tpu.memory_space<vmem>>, vector<4x8x128xf32>
    %105 = vector.shape_cast %104 : vector<4x8x128xf32> to vector<32x128xf32>
    %c0_62 = arith.constant 0 : index
    %c0_63 = arith.constant 0 : index
    %106 = vector.load %arg5[%c0_62, %c0_63] : memref<128x128xf32, #tpu.memory_space<vmem>>, vector<128x128xf32>
    %cst_64 = arith.constant dense<0.000000e+00> : vector<32x128xf32>
    %107 = tpu.matmul %105, %106, %cst_64 {dimension_numbers = #tpu.dot_dimension_numbers<[1], [0], [0], [1], [0, 0, 1, 1], [], []>} : vector<32x128xf32>, vector<128x128xf32>, vector<32x128xf32> -> vector<32x128xf32>
    %108 = vector.shape_cast %107 : vector<32x128xf32> to vector<4x8x128xf32>
    %c0_65 = arith.constant 0 : index
    %c0_66 = arith.constant 0 : index
    %c0_67 = arith.constant 0 : index
    %109 = vector.load %arg6[%c0_65, %c0_66, %c0_67] : memref<4x8x128xf32, #tpu.memory_space<vmem>>, vector<4x8x128xf32>
    tpu.vector_store %arg6[%c0_65, %c0_66, %c0_67], %108 {strides = array<i32>} : memref<4x8x128xf32, #tpu.memory_space<vmem>>, vector<4x8x128xf32>,
    %c0_68 = arith.constant 0 : index
    %c0_69 = arith.constant 0 : index
    %110 = vector.load %arg11[%c0_68, %c0_69] : memref<8x128xf32, #tpu.memory_space<vmem>>, vector<8x128xf32>
    %c0_70 = arith.constant 0 : index
    %c0_71 = arith.constant 0 : index
    %111 = vector.load %arg12[%c0_70, %c0_71] : memref<8x128xf32, #tpu.memory_space<vmem>>, vector<8x128xf32>
    %c0_i32_72 = arith.constant 0 : i32
    %cst_73 = arith.constant 0.818730771 : f32
    %112 = vector.broadcast %cst_73 : f32 to vector<8x128xf32>
    %113 = arith.mulf %112, %110 : vector<8x128xf32>
    %114 = arith.index_cast %c0_i32_72 : i32 to index
    %c0_74 = arith.constant 0 : index
    %c0_75 = arith.constant 0 : index
    %115 = vector.load %arg6[%114, %c0_74, %c0_75] : memref<4x8x128xf32, #tpu.memory_space<vmem>>, vector<1x8x128xf32>
    %116 = vector.shape_cast %115 : vector<1x8x128xf32> to vector<8x128xf32>
    %117 = arith.addf %113, %116 : vector<8x128xf32>
    %cst_76 = arith.constant 0.904837429 : f32
    %118 = vector.broadcast %cst_76 : f32 to vector<8x128xf32>
    %119 = arith.mulf %118, %111 : vector<8x128xf32>
    %120 = arith.addf %119, %117 : vector<8x128xf32>
    %121 = arith.index_cast %c0_i32_72 : i32 to index
    %c0_77 = arith.constant 0 : index
    %c0_78 = arith.constant 0 : index
    %122 = vector.load %arg6[%121, %c0_77, %c0_78] : memref<4x8x128xf32, #tpu.memory_space<vmem>>, vector<1x8x128xf32>
    %123 = vector.shape_cast %122 : vector<1x8x128xf32> to vector<8x128xf32>
    %124 = vector.shape_cast %120 : vector<8x128xf32> to vector<1x8x128xf32>
    tpu.vector_store %arg6[%121, %c0_77, %c0_78], %124 {strides = array<i32>} : memref<4x8x128xf32, #tpu.memory_space<vmem>>, vector<1x8x128xf32>,
    %c1_i32_79 = arith.constant 1 : i32
    %cst_80 = arith.constant 0.818730771 : f32
    %125 = vector.broadcast %cst_80 : f32 to vector<8x128xf32>
    %126 = arith.mulf %125, %117 : vector<8x128xf32>
    %127 = arith.index_cast %c1_i32_79 : i32 to index
    %c0_81 = arith.constant 0 : index
    %c0_82 = arith.constant 0 : index
    %128 = vector.load %arg6[%127, %c0_81, %c0_82] : memref<4x8x128xf32, #tpu.memory_space<vmem>>, vector<1x8x128xf32>
    %129 = vector.shape_cast %128 : vector<1x8x128xf32> to vector<8x128xf32>
    %130 = arith.addf %126, %129 : vector<8x128xf32>
    %cst_83 = arith.constant 0.904837429 : f32
    %131 = vector.broadcast %cst_83 : f32 to vector<8x128xf32>
    %132 = arith.mulf %131, %120 : vector<8x128xf32>
    %133 = arith.addf %132, %130 : vector<8x128xf32>
    %134 = arith.index_cast %c1_i32_79 : i32 to index
    %c0_84 = arith.constant 0 : index
    %c0_85 = arith.constant 0 : index
    %135 = vector.load %arg6[%134, %c0_84, %c0_85] : memref<4x8x128xf32, #tpu.memory_space<vmem>>, vector<1x8x128xf32>
    %136 = vector.shape_cast %135 : vector<1x8x128xf32> to vector<8x128xf32>
    %137 = vector.shape_cast %133 : vector<8x128xf32> to vector<1x8x128xf32>
    tpu.vector_store %arg6[%134, %c0_84, %c0_85], %137 {strides = array<i32>} : memref<4x8x128xf32, #tpu.memory_space<vmem>>, vector<1x8x128xf32>,
    %c2_i32_86 = arith.constant 2 : i32
    %cst_87 = arith.constant 0.818730771 : f32
    %138 = vector.broadcast %cst_87 : f32 to vector<8x128xf32>
    %139 = arith.mulf %138, %130 : vector<8x128xf32>
    %140 = arith.index_cast %c2_i32_86 : i32 to index
    %c0_88 = arith.constant 0 : index
    %c0_89 = arith.constant 0 : index
    %141 = vector.load %arg6[%140, %c0_88, %c0_89] : memref<4x8x128xf32, #tpu.memory_space<vmem>>, vector<1x8x128xf32>
    %142 = vector.shape_cast %141 : vector<1x8x128xf32> to vector<8x128xf32>
    %143 = arith.addf %139, %142 : vector<8x128xf32>
    %cst_90 = arith.constant 0.904837429 : f32
    %144 = vector.broadcast %cst_90 : f32 to vector<8x128xf32>
    %145 = arith.mulf %144, %133 : vector<8x128xf32>
    %146 = arith.addf %145, %143 : vector<8x128xf32>
    %147 = arith.index_cast %c2_i32_86 : i32 to index
    %c0_91 = arith.constant 0 : index
    %c0_92 = arith.constant 0 : index
    %148 = vector.load %arg6[%147, %c0_91, %c0_92] : memref<4x8x128xf32, #tpu.memory_space<vmem>>, vector<1x8x128xf32>
    %149 = vector.shape_cast %148 : vector<1x8x128xf32> to vector<8x128xf32>
    %150 = vector.shape_cast %146 : vector<8x128xf32> to vector<1x8x128xf32>
    tpu.vector_store %arg6[%147, %c0_91, %c0_92], %150 {strides = array<i32>} : memref<4x8x128xf32, #tpu.memory_space<vmem>>, vector<1x8x128xf32>,
    %c3_i32_93 = arith.constant 3 : i32
    %cst_94 = arith.constant 0.818730771 : f32
    %151 = vector.broadcast %cst_94 : f32 to vector<8x128xf32>
    %152 = arith.mulf %151, %143 : vector<8x128xf32>
    %153 = arith.index_cast %c3_i32_93 : i32 to index
    %c0_95 = arith.constant 0 : index
    %c0_96 = arith.constant 0 : index
    %154 = vector.load %arg6[%153, %c0_95, %c0_96] : memref<4x8x128xf32, #tpu.memory_space<vmem>>, vector<1x8x128xf32>
    %155 = vector.shape_cast %154 : vector<1x8x128xf32> to vector<8x128xf32>
    %156 = arith.addf %152, %155 : vector<8x128xf32>
    %cst_97 = arith.constant 0.904837429 : f32
    %157 = vector.broadcast %cst_97 : f32 to vector<8x128xf32>
    %158 = arith.mulf %157, %146 : vector<8x128xf32>
    %159 = arith.addf %158, %156 : vector<8x128xf32>
    %160 = arith.index_cast %c3_i32_93 : i32 to index
    %c0_98 = arith.constant 0 : index
    %c0_99 = arith.constant 0 : index
    %161 = vector.load %arg6[%160, %c0_98, %c0_99] : memref<4x8x128xf32, #tpu.memory_space<vmem>>, vector<1x8x128xf32>
    %162 = vector.shape_cast %161 : vector<1x8x128xf32> to vector<8x128xf32>
    %163 = vector.shape_cast %159 : vector<8x128xf32> to vector<1x8x128xf32>
    tpu.vector_store %arg6[%160, %c0_98, %c0_99], %163 {strides = array<i32>} : memref<4x8x128xf32, #tpu.memory_space<vmem>>, vector<1x8x128xf32>,
    %c4_i32_100 = arith.constant 4 : i32
    %c0_101 = arith.constant 0 : index
    %c0_102 = arith.constant 0 : index
    %164 = vector.load %arg11[%c0_101, %c0_102] : memref<8x128xf32, #tpu.memory_space<vmem>>, vector<8x128xf32>
    tpu.vector_store %arg11[%c0_101, %c0_102], %156 {strides = array<i32>} : memref<8x128xf32, #tpu.memory_space<vmem>>, vector<8x128xf32>,
    %c0_103 = arith.constant 0 : index
    %c0_104 = arith.constant 0 : index
    %165 = vector.load %arg12[%c0_103, %c0_104] : memref<8x128xf32, #tpu.memory_space<vmem>>, vector<8x128xf32>
    tpu.vector_store %arg12[%c0_103, %c0_104], %159 {strides = array<i32>} : memref<8x128xf32, #tpu.memory_space<vmem>>, vector<8x128xf32>,
    return
  }
  func.func @transform_0(%arg0: i32, %arg1: i32) -> (i32, i32, i32) {
    %c0_i32 = arith.constant 0 : i32
    %c0_i32_0 = arith.constant 0 : i32
    return %arg1, %arg0, %c0_i32 : i32, i32, i32
  }
  func.func @transform_1(%arg0: i32, %arg1: i32) -> (i32, i32) {
    %c0_i32 = arith.constant 0 : i32
    %c0_i32_0 = arith.constant 0 : i32
    %c0_i32_1 = arith.constant 0 : i32
    return %c0_i32, %c0_i32_0 : i32, i32
  }
  func.func @transform_2(%arg0: i32, %arg1: i32) -> (i32, i32) {
    %c0_i32 = arith.constant 0 : i32
    %c0_i32_0 = arith.constant 0 : i32
    %c0_i32_1 = arith.constant 0 : i32
    return %c0_i32, %c0_i32_0 : i32, i32
  }
  func.func @transform_3(%arg0: i32, %arg1: i32) -> (i32, i32) {
    %c0_i32 = arith.constant 0 : i32
    %c0_i32_0 = arith.constant 0 : i32
    %c0_i32_1 = arith.constant 0 : i32
    return %c0_i32, %c0_i32_0 : i32, i32
  }
  func.func @transform_4(%arg0: i32, %arg1: i32) -> (i32, i32, i32) {
    %c0_i32 = arith.constant 0 : i32
    %c0_i32_0 = arith.constant 0 : i32
    return %arg1, %arg0, %c0_i32 : i32, i32, i32
  }
}

</mosaic_0001>

<bundles_post_ra>
// kernel: rsnn_forward.1
= control target key start
LH: loop header
LB: loop body
LE: loop exit
PB: predicated region body
PF: predicated region fallthrough
CT: control target
= control target key end

     0   :  { %s1599_s15 = smov 0   ;;  %s1601_s16 = smov 0   ;;  %s1926_s0 = inlined_call_operand.vmem [shape: f32[16,16,16], index: 0, kind: input, shape index: {}]   ;;  %s1927_s1 = inlined_call_operand.vmem [shape: f32[16,128], index: 1, kind: input, shape index: {}]   ;;  %s1928_s2 = inlined_call_operand.vmem [shape: f32[128,128], index: 2, kind: input, shape index: {}]   ;;  %s1929_s3 = inlined_call_operand.vmem [shape: f32[128,128], index: 3, kind: input, shape index: {}]   ;;  %s1930_s4 = inlined_call_operand.vmem [shape: f32[16,16,128], index: 4, kind: output, shape index: {}]  }
   0x1   :  { %s1603_s17 = smov 0   ;;  %s1605_s18 = smov 0  }
   0x2   :  { %s1607_s19 = smov 0   ;;  %s1609_s20 = smov 0  }
   0x3   :  { %s1611_s21 = smov 0  }
   0x4 LB: > { %s23_s22 = sadd.s32 1, %s1559_s19  ;;  %s26_s23 = sadd.s32 1, %s1563_s20  ;;  %s1567_s21 = sphi %s1611_s21, %s14_s21   ;;  %s1563_s20 = sphi %s1609_s20, %s1937_s20   ;;  %s1559_s19 = sphi %s1607_s19, %s1936_s19   ;;  %s1555_s18 = sphi %s1605_s18, %s1935_s18   ;;  %s1551_s17 = sphi %s1603_s17, %s1934_s17   ;;  %s1547_s16 = sphi %s1601_s16, %s1933_s16   ;;  %s1543_s15 = sphi %s1599_s15, %s1932_s15  }
   0x5   : > { %p24_p0 = scmp.ge.s32.totalorder %s23_s22, 4  ;;  %s997_s24 = sadd.s32 4294967295, %s1567_s21  }
   0x6   : > { %p42_p1 = scmp.ne.s32.totalorder %s1547_s16, %s1543_s15  ;;  %p43_p2 = scmp.eq.s32.totalorder %s1567_s21, 0 }
   0x7   : > { %s1939_s22 = smov (%p24_p0, %s23_s22), 0  ;;  %s1941_s23 = smov (!%p24_p0, %s26_s23), %s1563_s20 }
   0x8   : > { %p28_p3 = scmp.ge.s32.totalorder %s1941_s23, 2  ;;  %p137_p4 = scmp.eq.s32.totalorder %s997_s24, 7 }
   0x9   : > { %s30_s25 = ssub.s32 %s1559_s19, %s1939_s22  ;;  %p44_p5 = por %p43_p2, %p42_p1 }
   0xa   : > { %s1943_s23 = smov (%p28_p3, %s1941_s23), 0  ;;  %p1647_p6 = por %p137_p4, %p42_p1 }
   0xb   : > { %s31_s27 = ssub.s32 %s1563_s20, %s1943_s23  ;;  %s35_s29 = sadd.s32 1, %s1547_s16 }
   0xc   : > { %s32_s28 = sor.u32 %s31_s27, %s30_s25  ;;  %p1000_p8 = scmp.ge.s32.totalorder %s1567_s21, 8 }
   0xd   : > { %p33_p7 = scmp.eq.s32.totalorder %s32_s28, 0 }
   0xe   : > { %168 = sbr.rel (%p1000_p8) target bundleno = 29 (0x1d), region = 28 }
   0xf   : > { %s1655_s30 = scalar_select %p33_p7, %s1547_s16, %s35_s29  }
  0x15   : > { %171 = sbr.rel (!%p44_p5) target bundleno = 29 (0x1d), region = 32  ;;  %s173_s5 = sand.u32 (%p44_p5), 1, %s1547_s16  }
  0x16   : > { %s1032_s6 = sshll.u32 (%p44_p5), %s1559_s19, 3  ;;  %s1001_s7 = sshll.u32 (%p44_p5), %s173_s5, 5 }
  0x17   : > { %s178_s8 = sadd.s32 (%p44_p5), %s1563_s20, %s1032_s6  ;;  %s175_s13 = scalar_lea.vmem (%p44_p5), [#allocation8], %s1001_s7 }
  0x18   : > { %s1004_s9 = sshll.u32 (%p44_p5), %s178_s8, 3 }
  0x19   : > { %s180_s12 = scalar_lea.vmem (%p44_p5), %s1926_s0, %s1004_s9 }
  0x1a   : > { %v214_v0 = vld [vmem:[%s180_s12] sm:$0xff] (%p44_p5)  ;;  %v216_v1 = vld [vmem:[%s180_s12 + $0x10] sm:$0xff] (%p44_p5) }
  0x1b   : > { %v218_v2 = vld [vmem:[%s180_s12 + $0x20] sm:$0xff] (%p44_p5)  ;;  %215 = vst [vmem:[%s175_s13] sm:$0xff] (%p44_p5), %v214_v0  ;;  %217 = vst [vmem:[%s175_s13 + $0x8] sm:$0xff] (%p44_p5), %v216_v1  ;;  %v220_v3 = vld [vmem:[%s180_s12 + $0x30] sm:$0xff] (%p44_p5) }
  0x1c   : > { %219 = vst [vmem:[%s175_s13 + $0x10] sm:$0xff] %v218_v2  ;;  %221 = vst [vmem:[%s175_s13 + $0x18] sm:$0xff] %v220_v3 }
  0x1d PF: > { %p1005_p9 = scmp.ge.s32.totalorder %s1567_s21, 1  ;;  %p226_p10 = scmp.lt.s32.totalorder %s1567_s21, 9 }
  0x1f   : > { %p227_p11 = pnand %p1005_p9, %p226_p10 }
  0x20   : > { %s233_s14 = sand.u32 (!%p227_p11), 1, %s1543_s15   ;;  %p1008_p12 = scmp.ne.s32.totalorder (!%p227_p11), %s1551_s17, 0 }
  0x21   : > { %230 = sbr.rel (%p227_p11) target bundleno = 1187 (0x4a3), region = 70  ;;  %s1006_s24 = sshll.u32 (!%p227_p11), %s233_s14, 5 }
  0x22   : > { %s1667_s25 = scalar_lea.vmem (!%p227_p11), [#allocation8], %s1006_s24  ;;  %s1669_s27 = scalar_lea.vmem (!%p227_p11), [#allocation9], %s1006_s24 }
  0x28   : > { %262 = sbr.rel (%p1008_p12) target bundleno = 47 (0x2f), region = 78  ;;  %v1569_v4 = vmov (!%p1008_p12), 0.0  }
  0x29   : > { %263 = vst [vmem:[#allocation3] sm:$0xff] (!%p1008_p12), %v1569_v4  ;;  %264 = vst [vmem:[#allocation4] sm:$0xff] (!%p1008_p12), %v1569_v4 }
  0x2a   : > { %265 = vst [vmem:[#allocation5] sm:$0xff] (!%p1008_p12), %v1569_v4  ;;  %266 = vst [vmem:[#allocation6] sm:$0xff] (!%p1008_p12), %v1569_v4 }
  0x2b   : > { %267 = vst [vmem:[#allocation7] sm:$0xff] (!%p1008_p12), %v1569_v4 }
  0x2f PF: > { %v376_v5 = vld [vmem:[%s1928_s2] sm:$0xff]  ;;  %v377_v6 = vld [vmem:[%s1928_s2 + $0x8] sm:$0xff]  ;;  %v378_v7 = vld [vmem:[%s1928_s2 + $0x10] sm:$0xff]  ;;  %v1570_v8 = vmov 0.0|0.0   ;;  %vm1571_vm0 = vmmov 0   ;;  %v1572_v11 = vmov 0.0  }
  0x30   : > { %1324 = vmatprep.subr.bf16.mxu1 %v1570_v8  ;;  %v1682_v9 = vpack.c.bf16 %v377_v6, %v376_v5  ;;  %v379_v10 = vld [vmem:[%s1928_s2 + $0x18] sm:$0xff]  ;;  %1174 = vmatprep.mubr.msk.f32.mxu1 %vm1571_vm0, %v1572_v11  ;;  %vm274_vm1 = vcmask 130048   ;;  %v380_v13 = vld [vmem:[%s1928_s2 + $0x20] sm:$0xff]  ;;  %v381_v14 = vld [vmem:[%s1928_s2 + $0x28] sm:$0xff]  ;;  %v1573_v52 = vmov 1.0   ;;  %s1033_s11 = sshll.u32 (%p1647_p6), %s1551_s17, 3 }
  0x31   : > { %v1690_v12 = vpack.c.bf16 %v379_v10, %v378_v7  ;;  %v272_v15 = vld [vmem:[%s1927_s1] sm:$0xff]  ;;  %v273_v16 = vld [vmem:[%s1927_s1 + $0x8] sm:$0xff]  ;;  %v1708_v19 = vpack.c.bf16 %v381_v14, %v380_v13  ;;  %v382_v20 = vld [vmem:[%s1928_s2 + $0x30] sm:$0xff]  ;;  %s878_s12 = sadd.s32 (%p1647_p6), %s1555_s18, %s1033_s11 }
  0x32   : > { %1326 = vmatpush3.bf16.msra.mxu1 %v1682_v9  ;;  %v268_v17 = vld [vmem:[%s1667_s25] sm:$0xff]  ;;  %v1320_v18 = vpack.c.bf16 %v273_v16, %v272_v15  ;;  %v383_v21 = vld [vmem:[%s1928_s2 + $0x38] sm:$0xff]  ;;  %v269_v22 = vld [vmem:[%s1667_s25 + $0x8] sm:$0xff]  ;;  %s1029_s13 = sshll.u32 (%p1647_p6), %s878_s12, 3 }
  0x33   : > { %1327 = vmatprep.subr.bf16.mxu1 %v1570_v8  ;;  %1136 = vmatprep.mubr.msk.f32.mxu0 %vm274_vm1, %v268_v17  ;;  %v1720_v23 = vpack.c.bf16 %v383_v21, %v382_v20  ;;  %v384_v24 = vld [vmem:[%s1928_s2 + $0x40] sm:$0xff]  ;;  %v385_v25 = vld [vmem:[%s1928_s2 + $0x48] sm:$0xff]  ;;  %v386_v27 = vld [vmem:[%s1928_s2 + $0x50] sm:$0xff]  ;;  %s880_s28 = scalar_lea.vmem (%p1647_p6), %s1930_s4, %s1029_s13 }
  0x34   : > { %1321 = vmatprep.subr.bf16.mxu0 %v1320_v18  ;;  %v1733_v26 = vpack.c.bf16 %v385_v25, %v384_v24  ;;  %v387_v28 = vld [vmem:[%s1928_s2 + $0x58] sm:$0xff]  ;;  %v388_v30 = vld [vmem:[%s1928_s2 + $0x60] sm:$0xff]  ;;  %v389_v31 = vld [vmem:[%s1928_s2 + $0x68] sm:$0xff] }
  0x35   : > { %1323 = vmatpush3.bf16.msra.mxu0 %v1320_v18  ;;  %v1745_v29 = vpack.c.bf16 %v387_v28, %v386_v27  ;;  %v1757_v32 = vpack.c.bf16 %v389_v31, %v388_v30  ;;  %v390_v33 = vld [vmem:[%s1928_s2 + $0x70] sm:$0xff]  ;;  %v391_v34 = vld [vmem:[%s1928_s2 + $0x78] sm:$0xff]  ;;  %v271_v38 = vld [vmem:[%s1667_s25 + $0x18] sm:$0xff] }
  0x36   : > { %1329 = vmatpush3.bf16.msra.mxu1 %v1690_v12  ;;  %1348 = vmatprep.subr.bf16.mxu0 %v1570_v8  ;;  %v1769_v35 = vpack.c.bf16 %v391_v34, %v390_v33  ;;  %v394_v36 = vld [vmem:[#allocation5] sm:$0xff]  ;;  %v270_v37 = vld [vmem:[%s1667_s25 + $0x10] sm:$0xff]  ;;  %v393_v41 = vld [vmem:[#allocation4] sm:$0xff] }
  0x37   : > { %1330 = vmatprep.subr.bf16.mxu1 %v1570_v8  ;;  %v392_v42 = vld [vmem:[#allocation3] sm:$0xff]  ;;  %v469_v43 = vmul.f32 0.9048374, %v393_v41  ;;  %v470_v44 = vsub.f32 1.0, %v394_v36  ;;  %v734_v56 = vld [vmem:[%s1929_s3 + $0x8] sm:$0xff]  ;;  %v735_v3 = vld [vmem:[%s1929_s3 + $0x10] sm:$0xff] }
  0x38   : > { %1137 = vmatmul.mubr.msk.f32.vlgmr.msra.gmra.mrb[0].mxu0 %vm274_vm1, %v269_v22  ;;  %v467_v45 = vmul.f32 0.8187308, %v392_v42  ;;  %v733_v55 = vld [vmem:[%s1929_s3] sm:$0xff]  ;;  %v736_v4 = vld [vmem:[%s1929_s3 + $0x18] sm:$0xff]  ;;  %v739_v14 = vld [vmem:[%s1929_s3 + $0x30] sm:$0xff] }
  0x39   : > { %1350 = vmatpush3.bf16.msra.mxu0 %v1682_v9  ;;  %1139 = vmatprep.mubr.msk.f32.mxu0 %vm274_vm1, %v270_v37  ;;  %v471_v47 = vmul.f32 %v470_v44, %v469_v43  ;;  %v1420_v57 = vpack.c.bf16 %v734_v56, %v733_v55  ;;  %v1424_v6 = vpack.c.bf16 %v736_v4, %v735_v3  ;;  %v737_v7 = vld [vmem:[%s1929_s3 + $0x20] sm:$0xff]  ;;  %v740_v15 = vld [vmem:[%s1929_s3 + $0x38] sm:$0xff]  ;;  %v743_v21 = vld [vmem:[%s1929_s3 + $0x50] sm:$0xff] }
  0x3a   : > { %1332 = vmatpush3.bf16.msra.mxu1 %v1708_v19  ;;  %1351 = vmatprep.subr.bf16.mxu0 %v1570_v8  ;;  %v1432_v17 = vpack.c.bf16 %v740_v15, %v739_v14  ;;  %v741_v18 = vld [vmem:[%s1929_s3 + $0x40] sm:$0xff]  ;;  %v744_v22 = vld [vmem:[%s1929_s3 + $0x58] sm:$0xff]  ;;  %v746_v25 = vld [vmem:[%s1929_s3 + $0x68] sm:$0xff] }
  0x3b   : > { %1333 = vmatprep.subr.bf16.mxu1 %v1570_v8  ;;  %v745_v24 = vld [vmem:[%s1929_s3 + $0x60] sm:$0xff]  ;;  %v747_v27 = vld [vmem:[%s1929_s3 + $0x70] sm:$0xff]  ;;  %v748_v28 = vld [vmem:[%s1929_s3 + $0x78] sm:$0xff] }
  0x3c   : > { %1140 = vmatmul.mubr.msk.f32.gmra.mrb[2].mxu0 %vm274_vm1, %v271_v38  ;;  %v839_v41 = vld [vmem:[#allocation7] sm:$0xff] }
  0x3d   : > { %1353 = vmatpush3.bf16.msra.mxu0 %v1690_v12  ;;  %1209 = vmatprep.mubr.msk.f32.mxu0 %vm1571_vm0, %v1572_v11  ;;  %v843_v44 = vmul.f32 0.9048374, %v839_v41 }
  0x3e   : > { %1335 = vmatpush3.bf16.msra.mxu1 %v1720_v23  ;;  %1354 = vmatprep.subr.bf16.mxu0 %v1570_v8 }
  0x3f   : > { %1336 = vmatprep.subr.bf16.mxu1 %v1570_v8 }
  0x41   : > { %1356 = vmatpush3.bf16.msra.mxu0 %v1708_v19 }
  0x42   : > { %1338 = vmatpush3.bf16.msra.mxu1 %v1733_v26  ;;  %1357 = vmatprep.subr.bf16.mxu0 %v1570_v8 }
  0x43   : > { %1339 = vmatprep.subr.bf16.mxu1 %v1570_v8 }
  0x45   : > { %1359 = vmatpush3.bf16.msra.mxu0 %v1720_v23 }
  0x46   : > { %1341 = vmatpush3.bf16.msra.mxu1 %v1745_v29  ;;  %1360 = vmatprep.subr.bf16.mxu0 %v1570_v8 }
  0x47   : > { %1342 = vmatprep.subr.bf16.mxu1 %v1570_v8 }
  0x49   : > { %1362 = vmatpush3.bf16.msra.mxu0 %v1733_v26 }
  0x4a   : > { %1344 = vmatpush3.bf16.msra.mxu1 %v1757_v32  ;;  %1363 = vmatprep.subr.bf16.mxu0 %v1570_v8 }
  0x4b   : > { %1345 = vmatprep.subr.bf16.mxu1 %v1570_v8 }
  0x4d   : > { %1365 = vmatpush3.bf16.msra.mxu0 %v1745_v29 }
  0x4e   : > { %1347 = vmatpush3.bf16.msra.mxu1 %v1769_v35  ;;  %1366 = vmatprep.subr.bf16.mxu0 %v1570_v8 }
  0x4f   : > { %1372 = vmatprep.subr.bf16.mxu1 %v1570_v8 }
  0x51   : > { %1175 = vmatmul.mubr.f32.vlgmr.msra.gmra.mrb[0].mxu1 %v394_v36  ;;  %1368 = vmatpush3.bf16.msra.mxu0 %v1757_v32 }
  0x52   : > { %1374 = vmatpush3.bf16.msra.mxu1 %v1682_v9  ;;  %1244 = vmatprep.mubr.msk.f32.mxu1 %vm1571_vm0, %v1572_v11 }
  0x53   : > { %1375 = vmatprep.subr.bf16.mxu1 %v1570_v8  ;;  %1369 = vmatprep.subr.bf16.mxu0 %v1570_v8 }
  0x55   : > { %1371 = vmatpush3.bf16.msra.mxu0 %v1769_v35 }
  0x56   : > { %1377 = vmatpush3.bf16.msra.mxu1 %v1690_v12  ;;  %1396 = vmatprep.subr.bf16.mxu0 %v1570_v8 }
  0x57   : > { %1378 = vmatprep.subr.bf16.mxu1 %v1570_v8 }
  0x5a   : > { %1380 = vmatpush3.bf16.msra.mxu1 %v1708_v19 }
  0x5b   : > { %1381 = vmatprep.subr.bf16.mxu1 %v1570_v8 }
  0x5e   : > { %1383 = vmatpush3.bf16.msra.mxu1 %v1720_v23 }
  0x5f   : > { %1384 = vmatprep.subr.bf16.mxu1 %v1570_v8 }
  0x62   : > { %1386 = vmatpush3.bf16.msra.mxu1 %v1733_v26 }
  0x63   : > { %1387 = vmatprep.subr.bf16.mxu1 %v1570_v8 }
  0x66   : > { %1389 = vmatpush3.bf16.msra.mxu1 %v1745_v29 }
  0x67   : > { %1390 = vmatprep.subr.bf16.mxu1 %v1570_v8 }
  0x6a   : > { %1392 = vmatpush3.bf16.msra.mxu1 %v1757_v32 }
  0x6b   : > { %1393 = vmatprep.subr.bf16.mxu1 %v1570_v8 }
  0x6e   : > { %1395 = vmatpush3.bf16.msra.mxu1 %v1769_v35 }
  0x6f   : > { %1421 = vmatprep.subr.bf16.mxu1 %v1420_v57 }
 0x10b   : > { %v1138_v39 = vpop.f32.mrb[0].mxu0 }
 0x10c   : > { %v353_v40 = vpop.f32.mrb[1].mxu0 }
 0x10f   : > { %v1824_v53 = vpop.f32.mrb[2].mxu0 }
 0x110   : > { %v363_v54 = vpop.f32.mrb[3].mxu0 }
 0x124   : > { %v462_v46 = vpop.f32.mrb[0].mxu1 }
 0x125   : > { %v466_v48 = vadd.f32 %v462_v46, %v353_v40  ;;  %v1176_v49 = vpop.f32.mrb[1].mxu1  ;;  %v838_v40 = vld [vmem:[#allocation6] sm:$0xff] }
 0x126   : > { %v840_v42 = vmul.f32 0.8187308, %v838_v40 }
 0x127   : > { %v468_v50 = vadd.f32 %v467_v45, %v466_v48 }
 0x129   : > { %v472_v51 = vadd.f32 %v471_v47, %v468_v50  ;;  %v550_v63 = vmul.f32 0.8187308, %v468_v50 }
 0x12b   : > { %vm473_vm2 = vcmp.gt.f32.partialorder %v472_v51, 1.0  ;;  %v552_v61 = vmul.f32 0.9048374, %v472_v51 }
 0x12c   : > { %1210 = vmatmul.mubr.msk.f32.vlgmr.msra.gmra.mrb[4].mxu0 %vm473_vm2, %v1573_v52  ;;  %v1013_v58 = vsel %vm473_vm2, 1.0, %v1572_v11 }
 0x12d   : > { %1398 = vmatpush3.bf16.msra.mxu0 %v1682_v9  ;;  %1279 = vmatprep.mubr.msk.f32.mxu0 %vm1571_vm0, %v1572_v11  ;;  %v553_v59 = vsub.f32 1.0, %v1013_v58 }
 0x12e   : > { %1399 = vmatprep.subr.bf16.mxu0 %v1570_v8 }
 0x12f   : > { %v554_v2 = vmul.f32 %v553_v59, %v552_v61 }
 0x131   : > { %1401 = vmatpush3.bf16.msra.mxu0 %v1690_v12 }
 0x132   : > { %1402 = vmatprep.subr.bf16.mxu0 %v1570_v8 }
 0x135   : > { %1404 = vmatpush3.bf16.msra.mxu0 %v1708_v19  ;;  %v742_v19 = vld [vmem:[%s1929_s3 + $0x48] sm:$0xff] }
 0x136   : > { %1405 = vmatprep.subr.bf16.mxu0 %v1570_v8  ;;  %v1436_v20 = vpack.c.bf16 %v742_v19, %v741_v18 }
 0x139   : > { %1407 = vmatpush3.bf16.msra.mxu0 %v1720_v23  ;;  %v1440_v23 = vpack.c.bf16 %v744_v22, %v743_v21 }
 0x13a   : > { %1408 = vmatprep.subr.bf16.mxu0 %v1570_v8 }
 0x13d   : > { %1410 = vmatpush3.bf16.msra.mxu0 %v1733_v26  ;;  %v1444_v26 = vpack.c.bf16 %v746_v25, %v745_v24 }
 0x13e   : > { %1411 = vmatprep.subr.bf16.mxu0 %v1570_v8 }
 0x141   : > { %1413 = vmatpush3.bf16.msra.mxu0 %v1745_v29  ;;  %v1448_v29 = vpack.c.bf16 %v748_v28, %v747_v27 }
 0x142   : > { %1414 = vmatprep.subr.bf16.mxu0 %v1570_v8 }
 0x145   : > { %1416 = vmatpush3.bf16.msra.mxu0 %v1757_v32 }
 0x146   : > { %1417 = vmatprep.subr.bf16.mxu0 %v1570_v8  ;;  %v738_v8 = vld [vmem:[%s1929_s3 + $0x28] sm:$0xff] }
 0x147   : > { %v1428_v13 = vpack.c.bf16 %v738_v8, %v737_v7 }
 0x149   : > { %1419 = vmatpush3.bf16.msra.mxu0 %v1769_v35 }
 0x1ff   : > { %v545_v60 = vpop.f32.mrb[4].mxu0 }
 0x200   : > { %v549_v62 = vadd.f32 %v1138_v39, %v545_v60  ;;  %v1211_v0 = vpop.f32.mrb[5].mxu0 }
 0x202   : > { %v551_v1 = vadd.f32 %v550_v63, %v549_v62 }
 0x204   : > { %v555_v5 = vadd.f32 %v554_v2, %v551_v1  ;;  %v633_v32 = vmul.f32 0.8187308, %v551_v1 }
 0x206   : > { %vm556_vm3 = vcmp.gt.f32.partialorder %v555_v5, 1.0  ;;  %v635_v10 = vmul.f32 0.9048374, %v555_v5 }
 0x207   : > { %v1015_v9 = vsel %vm556_vm3, 1.0, %v1572_v11  ;;  %1245 = vmatmul.mubr.msk.f32.vlgmr.msra.gmra.mrb[2].mxu1 %vm556_vm3, %v1573_v52 }
 0x208   : > { %v636_v12 = vsub.f32 1.0, %v1015_v9  ;;  %1423 = vmatpush3.bf16.msra.mxu1 %v1420_v57  ;;  %1314 = vmatprep.mubr.msk.f32.mxu1 %vm473_vm2, %v1573_v52 }
 0x209   : > { %1425 = vmatprep.subr.bf16.mxu1 %v1424_v6 }
 0x20a   : > { %v637_v16 = vmul.f32 %v636_v12, %v635_v10 }
 0x20c   : > { %1427 = vmatpush3.bf16.msra.mxu1 %v1424_v6 }
 0x20d   : > { %1429 = vmatprep.subr.bf16.mxu1 %v1428_v13 }
 0x210   : > { %1431 = vmatpush3.bf16.msra.mxu1 %v1428_v13 }
 0x211   : > { %1433 = vmatprep.subr.bf16.mxu1 %v1432_v17 }
 0x214   : > { %1435 = vmatpush3.bf16.msra.mxu1 %v1432_v17 }
 0x215   : > { %1437 = vmatprep.subr.bf16.mxu1 %v1436_v20 }
 0x218   : > { %1439 = vmatpush3.bf16.msra.mxu1 %v1436_v20 }
 0x219   : > { %1441 = vmatprep.subr.bf16.mxu1 %v1440_v23 }
 0x21c   : > { %1443 = vmatpush3.bf16.msra.mxu1 %v1440_v23 }
 0x21d   : > { %1445 = vmatprep.subr.bf16.mxu1 %v1444_v26 }
 0x220   : > { %1447 = vmatpush3.bf16.msra.mxu1 %v1444_v26 }
 0x221   : > { %1449 = vmatprep.subr.bf16.mxu1 %v1448_v29 }
 0x224   : > { %1451 = vmatpush3.bf16.msra.mxu1 %v1448_v29 }
 0x227   : > { %1315 = vmatmul.mubr.msk.f32.vlgmr.msra.gmra.mrb[4].mxu1 %vm556_vm3, %v1573_v52 }
 0x2da   : > { %v628_v30 = vpop.f32.mrb[2].mxu1 }
 0x2db   : > { %v632_v31 = vadd.f32 %v628_v30, %v363_v54  ;;  %v1246_v33 = vpop.f32.mrb[3].mxu1 }
 0x2dd   : > { %v634_v34 = vadd.f32 %v633_v32, %v632_v31 }
 0x2df   : > { %v638_v35 = vadd.f32 %v637_v16, %v634_v34  ;;  %v716_v56 = vmul.f32 0.8187308, %v634_v34 }
 0x2e1   : > { %vm639_vm4 = vcmp.gt.f32.partialorder %v638_v35, 1.0  ;;  %v718_v37 = vmul.f32 0.9048374, %v638_v35 }
 0x2e2   : > { %v1017_v36 = vsel %vm639_vm4, 1.0, %v1572_v11  ;;  %1280 = vmatmul.mubr.msk.f32.vlgmr.msra.gmra.mrb[6].mxu0 %vm639_vm4, %v1573_v52  ;;  %1317 = vmatprep.mubr.msk.f32.mxu1 %vm639_vm4, %v1573_v52 }
 0x2e3   : > { %v719_v38 = vsub.f32 1.0, %v1017_v36 }
 0x2e5   : > { %v720_v39 = vmul.f32 %v719_v38, %v718_v37 }
 0x2fa   : > { %v1316_v43 = vpop.f32.mrb[4].mxu1 }
 0x2fb   : > { %v815_v45 = vpop.f32.mrb[5].mxu1 }
 0x2fc   : > { %v842_v46 = vadd.f32 %v840_v42, %v815_v45 }
 0x2fe   : > { %v844_v47 = vadd.f32 %v843_v44, %v842_v46  ;;  %v846_v48 = vmul.f32 0.8187308, %v842_v46 }
 0x300   : > { %845 = vst [vmem:[%s1669_s27] sm:$0xff] %v844_v47  ;;  %v850_v49 = vmul.f32 0.9048374, %v844_v47  ;;  %v849_v50 = vadd.f32 %v1316_v43, %v846_v48 }
 0x302   : > { %v851_v51 = vadd.f32 %v850_v49, %v849_v50  ;;  %v853_v62 = vmul.f32 0.8187308, %v849_v50 }
 0x304   : > { %1021 = vst [vmem:[%s1669_s27 + $0x8] sm:$0xff] %v851_v51  ;;  %v857_v1 = vmul.f32 0.9048374, %v851_v51 }
 0x3b5   : > { %v711_v54 = vpop.f32.mrb[6].mxu0 }
 0x3b6   : > { %v715_v55 = vadd.f32 %v1824_v53, %v711_v54  ;;  %v1281_v57 = vpop.f32.mrb[7].mxu0 }
 0x3b8   : > { %v717_v58 = vadd.f32 %v716_v56, %v715_v55 }
 0x3ba   : > { %v721_v59 = vadd.f32 %v720_v39, %v717_v58  ;;  %726 = vst [vmem:[#allocation3] sm:$0xff] %v717_v58 }
 0x3bc   : > { %727 = vst [vmem:[#allocation4] sm:$0xff] %v721_v59  ;;  %vm722_vm5 = vcmp.gt.f32.partialorder %v721_v59, 1.0 }
 0x3bd   : > { %v1019_v60 = vsel %vm722_vm5, 1.0, %v1572_v11  ;;  %1318 = vmatmul.mubr.msk.f32.gmra.mrb[6].mxu1 %vm722_vm5, %v1573_v52  ;;  %v914_v11 = vld [vmem:[%s1669_s27] sm:$0xff] (%p1647_p6)  ;;  %v916_v52 = vld [vmem:[%s1669_s27 + $0x8] sm:$0xff] (%p1647_p6) }
 0x3be   : > { %728 = vst [vmem:[#allocation5] sm:$0xff] %v1019_v60  ;;  %915 = vst [vmem:[%s880_s28] sm:$0xff] (%p1647_p6), %v914_v11 }
 0x3bf   : > { %917 = vst [vmem:[%s880_s28 + $0x10] sm:$0xff] (%p1647_p6), %v916_v52 }
 0x490   : > { %v1319_v61 = vpop.f32.mrb[6].mxu1 }
 0x491   : > { %v825_v63 = vpop.f32.mrb[7].mxu1 }
 0x492   : > { %v856_v0 = vadd.f32 %v853_v62, %v825_v63 }
 0x494   : > { %v858_v53 = vadd.f32 %v857_v1, %v856_v0  ;;  %v860_v2 = vmul.f32 0.8187308, %v856_v0  ;;  %875 = sbr.rel (!%p1647_p6) target bundleno = 1187 (0x4a3), region = 82 }
 0x496   : > { %1023 = vst [vmem:[%s1669_s27 + $0x10] sm:$0xff] %v858_v53  ;;  %v863_v3 = vadd.f32 %v1319_v61, %v860_v2  ;;  %v864_v4 = vmul.f32 0.9048374, %v858_v53 }
 0x498   : > { %v865_v5 = vadd.f32 %v864_v4, %v863_v3  ;;  %867 = vst [vmem:[#allocation6] sm:$0xff] %v863_v3 }
 0x49a   : > { %1025 = vst [vmem:[%s1669_s27 + $0x18] sm:$0xff] %v865_v5  ;;  %868 = vst [vmem:[#allocation7] sm:$0xff] %v865_v5 }
 0x49d   : > { %v918_v6 = vld [vmem:[%s1669_s27 + $0x10] sm:$0xff] }
 0x49e   : > { %919 = vst [vmem:[%s880_s28 + $0x20] sm:$0xff] %v918_v6 }
 0x4a1   : > { %v920_v7 = vld [vmem:[%s1669_s27 + $0x18] sm:$0xff] }
 0x4a2   : > { %921 = vst [vmem:[%s880_s28 + $0x30] sm:$0xff] %v920_v7 }
 0x4a3 PF: > { %s14_s21 = sadd.s32 1, %s1567_s21   ;;  %s1932_s15 = smov %s1547_s16 }
 0x4a4   : > { %p11_p13 = scmp.ge.s32.totalorder %s14_s21, 10   ;;  %s1933_s16 = smov %s1655_s30 }
 0x4a5   : > { %s1934_s17 = smov %s1559_s19  ;;  %s1935_s18 = smov %s1563_s20 }
 0x4a6   : > { %s1936_s19 = smov %s1939_s22  ;;  %s1937_s20 = smov %s1943_s23 }
 0x4a7   :  { %13 = sbr.rel (!%p11_p13) target bundleno = 4 (0x4), region = 157 }

</bundles_post_ra>
